<compile_context>
chip_gen: v5e
topology: v5e:2x2
jax: 0.10.0
libtpu: 0.0.40
codegen_flags: <defaults>
</compile_context>

<pallas_src>
import functools

import jax
import jax.numpy as jnp
from jax.experimental import pallas as pl
from jax.experimental.pallas import tpu as pltpu


def _round_up(n: int, m: int) -> int:
    return ((n + m - 1) // m) * m


def _round_down(n: int, m: int) -> int:
    return (n // m) * m


def _cdiv(a: int, b: int) -> int:
    return -(-a // b)


def _logreg_kernel(x_ref, w_ref, b_ref, o_ref, acc_ref, *,
                   d_total, d_tile, mask_d_tail, compute_dtype):
    # x_ref:   (TB, TD) in VMEM   -- one batch x reduction tile per grid step
    # w_ref:   (1, TD)  in VMEM   -- weight slice for this reduction step
    # b_ref:   (1, 1)   in SMEM   -- scalar bias
    # o_ref:   (1, TB)  in VMEM   -- lane-dense output row (written at k==last)
    # acc_ref: (1, TB)  f32 VMEM scratch -- partial-sum accumulator across k
    k = pl.program_id(1)

    @pl.when(k == 0)
    def _():
        acc_ref[...] = jnp.zeros_like(acc_ref)

    x = x_ref[...]
    w = w_ref[...]
    if mask_d_tail:
        # The last reduction tile may run past D: those x columns are clipped /
        # stale DMA data and the matching w columns are out of bounds.  Zero
        # both so the accumulation stays exact (and NaN-free).  Pure VPU work,
        # free in this bandwidth-bound regime.
        x_col = jax.lax.broadcasted_iota(jnp.int32, x.shape, 1) + k * d_tile
        w_col = jax.lax.broadcasted_iota(jnp.int32, w.shape, 1) + k * d_tile
        x = jnp.where(x_col < d_total, x, jnp.zeros_like(x))
        w = jnp.where(w_col < d_total, w, jnp.zeros_like(w))

    # Promote in-kernel (post-DMA, so bf16 inputs still halve HBM traffic);
    # accumulate in f32 via preferred_element_type.
    x = x.astype(compute_dtype)
    w = w.astype(compute_dtype)

    # (1, TD) x (TB, TD) contracting TD -> (1, TB): "contract the last dim of
    # both operands", the same pattern flash attention uses for q @ k^T, so the
    # MXU is fed directly (no materialized transpose of the big x tile) and the
    # result is already lane-dense for the (1, TB) store.
    acc_ref[...] += jax.lax.dot_general(
        w, x,
        dimension_numbers=(((1,), (1,)), ((), ())),
        preferred_element_type=jnp.float32,
    )

    @pl.when(k == pl.num_programs(1) - 1)
    def _():
        z = acc_ref[...] + b_ref[0, 0]          # scalar bias from SMEM
        o_ref[...] = jax.nn.sigmoid(z).astype(o_ref.dtype)


def logistic_regression(x, w, b, *, target_tile_bytes: int = 4 * 1024 * 1024):
    """sigmoid(x @ w + b).  x: (B, D), w: (D, 1), b: scalar/(1,)/(1,1) -> (B, 1)."""
    B, D = x.shape
    w_row = w.reshape(1, D)                               # keep caller's dtype
    b_s = jnp.asarray(b, dtype=jnp.float32).reshape(1, 1)
    itemsize = jnp.dtype(x.dtype).itemsize
    compute_dtype = jnp.promote_types(x.dtype, w_row.dtype)

    # ---- Reduction (D) tile: full D if a >=256-row batch tile still fits the
    # byte budget, otherwise a multiple of 128 so VMEM stays bounded for any D.
    min_rows_when_splitting_d = 256
    if D * itemsize * min_rows_when_splitting_d <= target_tile_bytes:
        td = D
    else:
        td = max(128, _round_down(
            target_tile_bytes // (itemsize * min_rows_when_splitting_d), 128))
    n_d = _cdiv(D, td)
    mask_d_tail = (D % td) != 0

    # ---- Batch tile: sized by bytes (~target_tile_bytes of x per tile), a
    # multiple of 128 so the (1, TB) output blocks stay lane-aligned.
    tb = max(128, _round_down(target_tile_bytes // (itemsize * td), 128))
    tb = min(tb, _round_up(B, 128))           # never bigger than the whole batch
    # v7x has 2 TensorCores: split a large batch into enough tiles for the
    # "parallel" axis to load-balance them (neutral on single-TC v5e/v6e).
    total_x_bytes = B * D * itemsize
    if total_x_bytes > 16 * 1024 * 1024:
        min_b_tiles = 4
    elif total_x_bytes > 2 * 1024 * 1024:
        min_b_tiles = 2
    else:
        min_b_tiles = 1
    if min_b_tiles > 1:
        tb = min(tb, max(128, _round_up(_cdiv(B, min_b_tiles), 128)))
    n_b = _cdiv(B, tb)                        # no jnp.pad of x: partial last block
    bp = n_b * tb                             # only the tiny output row is padded

    # ---- x pipeline depth: with almost no compute to hide DMA behind, deepen
    # the pipeline when tiles are forced small; keep plain double-buffering for
    # multi-MiB tiles (extra buffers would just burn VMEM).
    x_tile_bytes = tb * td * itemsize
    if x_tile_bytes < (1 << 20) and n_b * n_d > 2:
        x_spec = pl.BlockSpec((tb, td), lambda i, k: (i, k),
                              pipeline_mode=pl.Buffered(3))
    else:
        x_spec = pl.BlockSpec((tb, td), lambda i, k: (i, k))

    kernel = functools.partial(
        _logreg_kernel,
        d_total=D, d_tile=td, mask_d_tail=mask_d_tail, compute_dtype=compute_dtype,
    )

    out_row = pl.pallas_call(
        kernel,
        out_shape=jax.ShapeDtypeStruct((1, bp), x.dtype),
        grid_spec=pltpu.PrefetchScalarGridSpec(
            num_scalar_prefetch=0,
            grid=(n_b, n_d),                  # reduction axis last
            in_specs=[
                x_spec,
                # w: one (1, TD) slice per reduction step (tiny DMA).
                pl.BlockSpec((1, td), lambda i, k: (0, k)),
                # bias: scalar in SMEM (no padded VMEM tile / broadcast).
                pl.BlockSpec(memory_space=pltpu.MemorySpace.SMEM),
            ],
            # Lane-dense (1, TB) output block; constant across k -> resident
            # accumulator pattern, written back when the batch tile changes.
            out_specs=pl.BlockSpec((1, tb), lambda i, k: (0, i)),
            scratch_shapes=[pltpu.VMEM((1, tb), jnp.float32)],
        ),
        compiler_params=pltpu.CompilerParams(
            # Batch tiles are independent -> parallel (sharded across both
            # TensorCores on v7x); D is a reduction -> arbitrary.
            dimension_semantics=("parallel", "arbitrary"),
            # Multi-MiB double-buffered tiles need more than v5e's 16 MiB
            # default scoped VMEM; 32 MiB is safe on every generation.
            vmem_limit_bytes=32 * 1024 * 1024,
        ),
    )(x, w_row, b_s)

    return out_row[:, :B].reshape(B, 1)


if __name__ == "__main__":
    # Small shapes consistent with the module: batch=8, input_dim=32.
    B, D = 8, 32
    key = jax.random.PRNGKey(0)
    kx, kw, kb = jax.random.split(key, 3)

    x = jax.random.normal(kx, (B, D), dtype=jnp.float32)
    # Deterministic init mimicking nn.Linear's uniform(-1/sqrt(D), 1/sqrt(D)).
    bound = 1.0 / jnp.sqrt(jnp.float32(D))
    w = jax.random.uniform(kw, (D, 1), minval=-bound, maxval=bound, dtype=jnp.float32)
    b = jax.random.uniform(kb, (1, 1), minval=-bound, maxval=bound, dtype=jnp.float32)

    out = logistic_regression(x, w, b)
    out = jax.block_until_ready(out)

    # Pure-JAX reference of the forward pass.
    ref = jax.nn.sigmoid(
        jnp.dot(x, w, precision=jax.lax.Precision.HIGHEST) + b
    )
    assert out.shape == (B, 1)
    assert jnp.allclose(out, ref, atol=1e-5, rtol=1e-5)

    print("KERNEL_OK")
</pallas_src>

<mosaic_0001>
module attributes {stable_mosaic.version = 11 : i64} {
  func.func @_logreg_kernel(%arg0: i32, %arg1: i32, %arg2: memref<128x32xf32, #tpu.memory_space<vmem>>, %arg3: memref<1x32xf32, #tpu.memory_space<vmem>>, %arg4: memref<1x1xf32, #tpu.memory_space<smem>>, %arg5: memref<1x128xf32, #tpu.memory_space<vmem>>, %arg6: memref<1x128xf32, #tpu.memory_space<vmem>>) attributes {dimension_semantics = [#tpu.dimension_semantics<parallel>, #tpu.dimension_semantics<arbitrary>], iteration_bounds = array<i64: 1, 1>, scalar_prefetch = 0 : i64, scratch_operands = 1 : i64, tpu.core_type = #tpu.core_type<tc>, window_params = [{transform_indices = @transform_0, window_bounds = array<i64: 128, 32>}, {transform_indices = @transform_1, window_bounds = array<i64: 1, 32>}, {transform_indices = @transform_2, window_bounds = array<i64: 1, 1>}, {transform_indices = @transform_3, window_bounds = array<i64: 1, 128>}]} {
    %c0_i32 = arith.constant 0 : i32
    %0 = arith.cmpi eq, %arg1, %c0_i32 : i32
    %1 = arith.extui %0 : i1 to i32
    %c0_i32_0 = arith.constant 0 : i32
    %2 = arith.cmpi ne, %1, %c0_i32_0 : i32
    scf.if %2 {
      %cst_10 = arith.constant 0.000000e+00 : f32
      %12 = vector.broadcast %cst_10 : f32 to vector<1x128xf32>
      %c0_11 = arith.constant 0 : index
      %c0_12 = arith.constant 0 : index
      %13 = vector.load %arg6[%c0_11, %c0_12] : memref<1x128xf32, #tpu.memory_space<vmem>>, vector<1x128xf32>
      tpu.vector_store %arg6[%c0_11, %c0_12], %12 {strides = array<i32>} : memref<1x128xf32, #tpu.memory_space<vmem>>, vector<1x128xf32>,
    } else {
    }
    %c0 = arith.constant 0 : index
    %c0_1 = arith.constant 0 : index
    %3 = vector.load %arg2[%c0, %c0_1] : memref<128x32xf32, #tpu.memory_space<vmem>>, vector<128x32xf32>
    %c0_2 = arith.constant 0 : index
    %c0_3 = arith.constant 0 : index
    %4 = vector.load %arg3[%c0_2, %c0_3] : memref<1x32xf32, #tpu.memory_space<vmem>>, vector<1x32xf32>
    %c0_4 = arith.constant 0 : index
    %c0_5 = arith.constant 0 : index
    %5 = vector.load %arg6[%c0_4, %c0_5] : memref<1x128xf32, #tpu.memory_space<vmem>>, vector<1x128xf32>
    %cst = arith.constant dense<0.000000e+00> : vector<1x128xf32>
    %6 = tpu.matmul %4, %3, %cst {dimension_numbers = #tpu.dot_dimension_numbers<[1], [1], [0], [0], [0, 0, 1, 0], [], []>} : vector<1x32xf32>, vector<128x32xf32>, vector<1x128xf32> -> vector<1x128xf32>
    %7 = arith.addf %5, %6 : vector<1x128xf32>
    %c0_6 = arith.constant 0 : index
    %c0_7 = arith.constant 0 : index
    %8 = vector.load %arg6[%c0_6, %c0_7] : memref<1x128xf32, #tpu.memory_space<vmem>>, vector<1x128xf32>
    tpu.vector_store %arg6[%c0_6, %c0_7], %7 {strides = array<i32>} : memref<1x128xf32, #tpu.memory_space<vmem>>, vector<1x128xf32>,
    %c0_i32_8 = arith.constant 0 : i32
    %9 = arith.cmpi eq, %arg1, %c0_i32_8 : i32
    %10 = arith.extui %9 : i1 to i32
    %c0_i32_9 = arith.constant 0 : i32
    %11 = arith.cmpi ne, %10, %c0_i32_9 : i32
    scf.if %11 {
      %c0_10 = arith.constant 0 : index
      %c0_11 = arith.constant 0 : index
      %12 = vector.load %arg6[%c0_10, %c0_11] : memref<1x128xf32, #tpu.memory_space<vmem>>, vector<1x128xf32>
      %c0_12 = arith.constant 0 : index
      %c0_13 = arith.constant 0 : index
      %13 = memref.load %arg4[%c0_12, %c0_13] : memref<1x1xf32, #tpu.memory_space<smem>>
      %14 = vector.broadcast %13 : f32 to vector<1x128xf32>
      %15 = arith.addf %12, %14 : vector<1x128xf32>
      %16 = arith.negf %15 : vector<1x128xf32>
      %17 = math.exp %16 : vector<1x128xf32>
      %cst_14 = arith.constant 1.000000e+00 : f32
      %18 = vector.broadcast %cst_14 : f32 to vector<1x128xf32>
      %19 = arith.addf %18, %17 : vector<1x128xf32>
      %20 = arith.divf %18, %19 : vector<1x128xf32>
      %c0_15 = arith.constant 0 : index
      %c0_16 = arith.constant 0 : index
      %21 = vector.load %arg5[%c0_15, %c0_16] : memref<1x128xf32, #tpu.memory_space<vmem>>, vector<1x128xf32>
      tpu.vector_store %arg5[%c0_15, %c0_16], %20 {strides = array<i32>} : memref<1x128xf32, #tpu.memory_space<vmem>>, vector<1x128xf32>,
    } else {
    }
    return
  }
  func.func @transform_0(%arg0: i32, %arg1: i32) -> (i32, i32) {
    %c0_i32 = arith.constant 0 : i32
    return %arg0, %arg1 : i32, i32
  }
  func.func @transform_1(%arg0: i32, %arg1: i32) -> (i32, i32) {
    %c0_i32 = arith.constant 0 : i32
    %c0_i32_0 = arith.constant 0 : i32
    return %c0_i32, %arg1 : i32, i32
  }
  func.func @transform_2(%arg0: i32, %arg1: i32) -> (i32, i32) {
    %c0_i32 = arith.constant 0 : i32
    %c0_i32_0 = arith.constant 0 : i32
    %c0_i32_1 = arith.constant 0 : i32
    return %c0_i32, %c0_i32_0 : i32, i32
  }
  func.func @transform_3(%arg0: i32, %arg1: i32) -> (i32, i32) {
    %c0_i32 = arith.constant 0 : i32
    %c0_i32_0 = arith.constant 0 : i32
    return %c0_i32, %arg0 : i32, i32
  }
}

</mosaic_0001>

<bundles_post_ra>
// kernel: tpu_custom_call.1
= control target key start
LH: loop header
LB: loop body
LE: loop exit
PB: predicated region body
PF: predicated region fallthrough
CT: control target
= control target key end

     0   :  { %9 = vsyncpa [#allocation5], 0  ;;  %s306_s0 = inlined_call_operand.hbm [shape: f32[8,32], index: 0, kind: input, shape index: {}]   ;;  %s307_s1 = inlined_call_operand.vmem [shape: f32[1,32], index: 1, kind: input, shape index: {}]   ;;  %s308_s2 = inlined_call_operand.<no memory space> [shape: f32[1,1], index: 2, kind: input, shape index: {}]   ;;  %s309_s3 = inlined_call_operand.hbm [shape: f32[1,128], index: 3, kind: output, shape index: {}]  }
   0x1   :  { %10 = vsyncpa [#allocation6], 0 }
   0x2   :  { %14 = vsyncadd [#allocation5], 1920  ;;  %s15_s14 = sshll.u32 %s306_s0, 4  ;;  %s252_s15 = smov [#allocation4]   ;;  %s16_s14 = int_to_ptr.hbm [resolvable:$true] %s15_s14 }
   0x3   :  { %s17_s16 = sshll.u32 %s252_s15, 4  ;;  %s253_s17 = smov 128   ;;  %s18_s16 = int_to_ptr.vmem [resolvable:$true] %s17_s16 }
   0x4   :  { %s254_s18 = smov 8  }
   0x5   :  { %23 = dma.hbm_to_vmem [thread:$0]  %s16_s14, 128, %s18_s16, [#allocation5], %s253_s17, %s253_s17, %s254_s18  }
   0x6   :  { %248 = dma.done.wait [#allocation5], 2048  }
   0x7   :  { %249 = vsyncadd [#allocation5], 4294965248  ;;  %vm55_vm0 = vcmask 261120   ;;  %v52_v0 = vld [vmem:[#allocation4 + $0x78] sm:$0xff]  ;;  %v51_v1 = vld [vmem:[#allocation4 + $0x70] sm:$0xff]  ;;  %v255_v9 = vmov 0.0   ;;  %v134_v21 = vstv %s308_s2 }
   0x8   :  { %173 = vmatpush.xpose.msk.msra.mxu0 %vm55_vm0, %v52_v0  ;;  %v50_v2 = vld [vmem:[#allocation4 + $0x68] sm:$0xff]  ;;  %v49_v3 = vld [vmem:[#allocation4 + $0x60] sm:$0xff]  ;;  %v48_v4 = vld [vmem:[#allocation4 + $0x58] sm:$0xff]  ;;  %36 = vst [vmem:[#allocation2] sm:$0x1] %v255_v9  ;;  %s163_s2 = sshll.u32 %s309_s3, 4  ;;  %s164_s2 = int_to_ptr.hbm [resolvable:$true] %s163_s2 }
   0x9   :  { %v47_v5 = vld [vmem:[#allocation4 + $0x50] sm:$0xff]  ;;  %v46_v6 = vld [vmem:[#allocation4 + $0x48] sm:$0xff]  ;;  %v45_v7 = vld [vmem:[#allocation4 + $0x40] sm:$0xff] }
   0xa   :  { %v44_v8 = vld [vmem:[#allocation4 + $0x38] sm:$0xff]  ;;  %v43_v10 = vld [vmem:[#allocation4 + $0x30] sm:$0xff]  ;;  %v42_v11 = vld [vmem:[#allocation4 + $0x28] sm:$0xff] }
   0xb   :  { %v41_v12 = vld [vmem:[#allocation4 + $0x20] sm:$0xff]  ;;  %v40_v13 = vld [vmem:[#allocation4 + $0x18] sm:$0xff]  ;;  %v39_v14 = vld [vmem:[#allocation4 + $0x10] sm:$0xff] }
   0xc   :  { %174 = vmatpush.xpose.msk.msra.mxu0 %vm55_vm0, %v51_v1  ;;  %v38_v15 = vld [vmem:[#allocation4 + $0x8] sm:$0xff]  ;;  %v37_v16 = vld [vmem:[#allocation4] sm:$0xff]  ;;  %v53_v17 = vld [vmem:[%s307_s1] sm:$0x1]  ;;  %s256_s1 = smov [#allocation7]  }
   0xd   :  { %s161_s22 = sshll.u32 %s256_s1, 4  ;;  %s162_s22 = int_to_ptr.vmem [resolvable:$true] %s161_s22 }
   0xf   :  { %v54_v18 = vld [vmem:[#allocation2] sm:$0x1] }
  0x10   :  { %175 = vmatpush.xpose.msk.msra.mxu0 %vm55_vm0, %v50_v2 }
  0x14   :  { %176 = vmatpush.xpose.msk.msra.mxu0 %vm55_vm0, %v49_v3 }
  0x18   :  { %177 = vmatpush.xpose.msk.msra.mxu0 %vm55_vm0, %v48_v4 }
  0x1c   :  { %178 = vmatpush.xpose.msk.msra.mxu0 %vm55_vm0, %v47_v5 }
  0x20   :  { %179 = vmatpush.xpose.msk.msra.mxu0 %vm55_vm0, %v46_v6 }
  0x24   :  { %180 = vmatpush.xpose.msk.msra.mxu0 %vm55_vm0, %v45_v7 }
  0x28   :  { %181 = vmatpush.xpose.msk.msra.mxu0 %vm55_vm0, %v44_v8 }
  0x2c   :  { %182 = vmatpush.xpose.msk.msra.mxu0 %vm55_vm0, %v43_v10 }
  0x30   :  { %183 = vmatpush.xpose.msk.msra.mxu0 %vm55_vm0, %v42_v11 }
  0x34   :  { %184 = vmatpush.xpose.msk.msra.mxu0 %vm55_vm0, %v41_v12 }
  0x38   :  { %185 = vmatpush.xpose.msk.msra.mxu0 %vm55_vm0, %v40_v13 }
  0x3c   :  { %186 = vmatpush.xpose.msk.msra.mxu0 %vm55_vm0, %v39_v14 }
  0x40   :  { %187 = vmatpush.xpose.msk.msra.mxu0 %vm55_vm0, %v38_v15 }
  0x44   :  { %188 = vmatpush.xpose.msk.msra.mxu0 %vm55_vm0, %v37_v16 }
  0x47   :  { %189 = vmatmul.msk.f32.vlgmr.msra.gmra.mxu0 %vm55_vm0, %v53_v17 }
  0xc4   :  { %v124_v19 = vpop.f32.mrf.mxu0 }
  0xc5   :  { %v127_v20 = vadd.f32 %v124_v19, %v54_v18 }
  0xc7   :  { %128 = vst [vmem:[#allocation2] sm:$0x1] %v127_v20 }
  0xce   :  { %v132_v22 = vld [vmem:[#allocation2] sm:$0x1] }
  0xcf   :  { %v135_v23 = vadd.f32 %v134_v21, %v132_v22 }
  0xd1   :  { %v190_v24 = vmul.f32 -1.442695, %v135_v23 }
  0xd3   :  { %196 = vpow2.f32 %v190_v24 }
  0xd9   :  { %v197_v25 = vpop.eup %196 }
  0xda   :  { %v139_v26 = vadd.f32 1.0, %v197_v25 }
  0xdc   :  { %198 = vrcp.f32 %v139_v26  ;;  %v151_v30 = vand.u32 2147483648, %v139_v26  ;;  %v149_v32 = vand.u32 2147483647, %v139_v26  ;;  %vm145_vm2 = vweird.f32 %v139_v26 }
  0xde   :  { %v152_v34 = vor.u32 1.1754944e-38, %v151_v30  ;;  %vm150_vm4 = vcmp.eq.f32.partialorder %v149_v32, 8.507059e+37 }
  0xe2   :  { %v199_v27 = vpop.eup %198 }
  0xe3   :  { %v141_v28 = vmul.f32 %v199_v27, %v139_v26  ;;  %vm146_vm1 = vweird.f32 %v199_v27 }
  0xe4   :  { %vm147_vm3 = vmor %vm145_vm2, %vm146_vm1 }
  0xe5   :  { %v142_v29 = vsub.f32 1.0, %v141_v28 }
  0xe7   :  { %v143_v31 = vmul.f32 %v199_v27, %v142_v29 }
  0xe9   :  { %v144_v33 = vadd.f32 %v199_v27, %v143_v31 }
  0xeb   :  { %v148_v35 = vsel %vm147_vm3, %v199_v27, %v144_v33 }
  0xec   :  { %v153_v36 = vsel %vm150_vm4, %v152_v34, %v148_v35 }
  0xed   :  { %155 = vst [vmem:[#allocation7] sm:$0x1] %v153_v36 }
  0xee   :  { %166 = dma.vmem_to_hbm [thread:$0]  %s162_s22, 16, %s164_s2, [#allocation6]  }
  0xef   :  { %250 = dma.done.wait [#allocation6], 16  }
  0xf0   :  { %251 = vsyncadd [#allocation6], 4294967280 }
  0xf1   :  { %171 = vsyncpa [#allocation5], 1 }
  0xf2   :  { %172 = vsyncpa [#allocation6], 1 }

</bundles_post_ra>
